<compile_context>
chip_gen: v7x
topology: tpu7x:2x2x1
jax: 0.10.0
libtpu: 0.0.40
codegen_flags: <defaults>
</compile_context>

<pallas_src>
import jax
import jax.numpy as jnp
from jax.experimental import pallas as pl
from jax.experimental.pallas import tpu as pltpu

NEURONS = 20          # hidden width, from the reference module
OUT_FEATURES = 2      # encoder output width
H_PAD = 128           # hidden padded to full lane width (MXU-friendly)
OUT_PAD = 8           # output padded only to 8 cols -> 16x less writeback
TILE_B_MAX = 4096     # large tiles amortize per-grid-step overhead
MIN_GRID_STEPS = 4    # keep >= 4 grid steps at realistic B (v7x 2 TCs)
VMEM_LIMIT = 32 * 1024 * 1024  # raise v5e's 16 MiB default; safe on v6e/v7x


def _round_up(n, m):
    return ((n + m - 1) // m) * m


def mlp_kernel(x_ref, w1_ref, b1_ref, w2_ref, b2_ref, o_ref):
    # Two small MXU matmuls; bias-add on VPU, tanh on EUP; padded lanes stay 0.
    x = x_ref[...]                                              # (tile_b, F)
    h = jnp.dot(x, w1_ref[...], preferred_element_type=jnp.float32)
    h = jnp.tanh(h + b1_ref[...])                               # (tile_b, H_PAD)
    y = jnp.dot(h, w2_ref[...], preferred_element_type=jnp.float32)
    o_ref[...] = (y + b2_ref[...]).astype(o_ref.dtype)          # (tile_b, OUT_PAD)


@jax.jit
def mlp_forward(x, w1, b1, w2, b2):
    """Forward pass: tanh(x @ w1 + b1) @ w2 + b2.

    x:  (B, F) float32
    w1: (F, NEURONS), b1: (1, NEURONS)
    w2: (NEURONS, OUT_FEATURES), b2: (1, OUT_FEATURES)
    returns (B, OUT_FEATURES) float32
    """
    B, F = x.shape
    H = w1.shape[1]
    OUT = w2.shape[1]

    # Batch tile: multiple of 8 sublanes, large enough to amortize per-step
    # overhead, small enough to leave >= MIN_GRID_STEPS steps for big B.
    tile_b = min(TILE_B_MAX, max(8, _round_up(pl.cdiv(B, MIN_GRID_STEPS), 8)))
    grid = (pl.cdiv(B, tile_b),)   # ragged final block handled by Pallas

    # Zero-pad only the tiny weight/bias operands (inert: tanh(0)=0,
    # zero weight rows/cols contribute nothing).  x is NOT padded/copied.
    w1_p = jnp.pad(w1, ((0, 0), (0, H_PAD - H)))
    b1_p = jnp.pad(b1, ((0, 0), (0, H_PAD - H)))
    w2_p = jnp.pad(w2, ((0, H_PAD - H), (0, OUT_PAD - OUT)))
    b2_p = jnp.pad(b2, ((0, 0), (0, OUT_PAD - OUT)))

    cost = pl.CostEstimate(
        flops=2 * B * (F * H_PAD + H_PAD * OUT_PAD),
        transcendentals=B * H_PAD,
        bytes_accessed=4 * (x.size + w1_p.size + b1_p.size
                            + w2_p.size + b2_p.size + B * OUT_PAD),
    )

    out = pl.pallas_call(
        mlp_kernel,
        out_shape=jax.ShapeDtypeStruct((B, OUT_PAD), jnp.float32),
        grid=grid,
        in_specs=[
            # x: batch-tiled, pipelined/double-buffered across grid steps.
            pl.BlockSpec((tile_b, F), lambda i: (i, 0)),
            # weights/biases: constant index_map -> VMEM-resident across steps.
            pl.BlockSpec((F, H_PAD), lambda i: (0, 0)),
            pl.BlockSpec((1, H_PAD), lambda i: (0, 0)),
            pl.BlockSpec((H_PAD, OUT_PAD), lambda i: (0, 0)),
            pl.BlockSpec((1, OUT_PAD), lambda i: (0, 0)),
        ],
        out_specs=pl.BlockSpec((tile_b, OUT_PAD), lambda i: (i, 0)),
        compiler_params=pltpu.CompilerParams(
            dimension_semantics=("parallel",),
            vmem_limit_bytes=VMEM_LIMIT,
        ),
        cost_estimate=cost,
    )(x, w1_p, b1_p, w2_p, b2_p)

    # Strip the 6 padded output columns (rows are already exact: B, not b_pad).
    return out[:, :OUT]


def init_params(key, in_features, hidden, out_features):
    # Deterministic init mimicking PyTorch's default Linear init:
    # U(-1/sqrt(fan_in), 1/sqrt(fan_in)) for both weights and biases.
    k1, k2, k3, k4 = jax.random.split(key, 4)
    lim1 = 1.0 / jnp.sqrt(in_features)
    lim2 = 1.0 / jnp.sqrt(hidden)
    w1 = jax.random.uniform(k1, (in_features, hidden), jnp.float32, -lim1, lim1)
    b1 = jax.random.uniform(k2, (1, hidden), jnp.float32, -lim1, lim1)
    w2 = jax.random.uniform(k3, (hidden, out_features), jnp.float32, -lim2, lim2)
    b2 = jax.random.uniform(k4, (1, out_features), jnp.float32, -lim2, lim2)
    return w1, b1, w2, b2


if __name__ == "__main__":
    key = jax.random.PRNGKey(0)
    kx, kx2, kp = jax.random.split(key, 3)

    batch, in_features = 8, 16  # X.shape = (batch, in_features)
    w1, b1, w2, b2 = init_params(kp, in_features, NEURONS, OUT_FEATURES)

    # Small-batch check (single grid step).
    x = jax.random.normal(kx, (batch, in_features), jnp.float32)
    out = jax.block_until_ready(mlp_forward(x, w1, b1, w2, b2))
    ref = jnp.tanh(x @ w1 + b1) @ w2 + b2
    assert out.shape == (batch, OUT_FEATURES)
    assert jnp.allclose(out, ref, atol=1e-5, rtol=1e-5)

    # Larger, non-multiple batch: exercises multi-step grid + ragged last tile.
    big_batch = 1030
    xb = jax.random.normal(kx2, (big_batch, in_features), jnp.float32)
    outb = jax.block_until_ready(mlp_forward(xb, w1, b1, w2, b2))
    refb = jnp.tanh(xb @ w1 + b1) @ w2 + b2
    assert outb.shape == (big_batch, OUT_FEATURES)
    assert jnp.allclose(outb, refb, atol=1e-5, rtol=1e-5)

    print("KERNEL_OK")
</pallas_src>

<mosaic_0001>
module attributes {stable_mosaic.version = 11 : i64} {
  func.func @mlp_kernel(%arg0: i32, %arg1: memref<8x16xf32, #tpu.memory_space<vmem>>, %arg2: memref<16x128xf32, #tpu.memory_space<vmem>>, %arg3: memref<1x128xf32, #tpu.memory_space<vmem>>, %arg4: memref<128x8xf32, #tpu.memory_space<vmem>>, %arg5: memref<1x8xf32, #tpu.memory_space<vmem>>, %arg6: memref<8x8xf32, #tpu.memory_space<vmem>>) attributes {dimension_semantics = [#tpu.dimension_semantics<parallel>], iteration_bounds = array<i64: 1>, scalar_prefetch = 0 : i64, scratch_operands = 0 : i64, tpu.core_type = #tpu.core_type<tc>, window_params = [{transform_indices = @transform_0, window_bounds = array<i64: 8, 16>}, {pipeline_mode = #tpu.pipeline_mode<synchronous>, transform_indices = @transform_1, window_bounds = array<i64: 16, 128>}, {pipeline_mode = #tpu.pipeline_mode<synchronous>, transform_indices = @transform_2, window_bounds = array<i64: 1, 128>}, {pipeline_mode = #tpu.pipeline_mode<synchronous>, transform_indices = @transform_3, window_bounds = array<i64: 128, 8>}, {pipeline_mode = #tpu.pipeline_mode<synchronous>, transform_indices = @transform_4, window_bounds = array<i64: 1, 8>}, {transform_indices = @transform_5, window_bounds = array<i64: 8, 8>}]} {
    %c0 = arith.constant 0 : index
    %c0_0 = arith.constant 0 : index
    %0 = vector.load %arg1[%c0, %c0_0] : memref<8x16xf32, #tpu.memory_space<vmem>>, vector<8x16xf32>
    %c0_1 = arith.constant 0 : index
    %c0_2 = arith.constant 0 : index
    %1 = vector.load %arg2[%c0_1, %c0_2] : memref<16x128xf32, #tpu.memory_space<vmem>>, vector<16x128xf32>
    %cst = arith.constant dense<0.000000e+00> : vector<8x128xf32>
    %2 = tpu.matmul %0, %1, %cst {dimension_numbers = #tpu.dot_dimension_numbers<[1], [0], [0], [1], [0, 0, 1, 1], [], []>} : vector<8x16xf32>, vector<16x128xf32>, vector<8x128xf32> -> vector<8x128xf32>
    %c0_3 = arith.constant 0 : index
    %c0_4 = arith.constant 0 : index
    %3 = vector.load %arg3[%c0_3, %c0_4] : memref<1x128xf32, #tpu.memory_space<vmem>>, vector<1x128xf32>
    %4 = vector.broadcast %3 : vector<1x128xf32> to vector<8x128xf32>
    %5 = arith.addf %2, %4 : vector<8x128xf32>
    %6 = math.tanh %5 : vector<8x128xf32>
    %c0_5 = arith.constant 0 : index
    %c0_6 = arith.constant 0 : index
    %7 = vector.load %arg4[%c0_5, %c0_6] : memref<128x8xf32, #tpu.memory_space<vmem>>, vector<128x8xf32>
    %cst_7 = arith.constant dense<0.000000e+00> : vector<8x8xf32>
    %8 = tpu.matmul %6, %7, %cst_7 {dimension_numbers = #tpu.dot_dimension_numbers<[1], [0], [0], [1], [0, 0, 1, 1], [], []>} : vector<8x128xf32>, vector<128x8xf32>, vector<8x8xf32> -> vector<8x8xf32>
    %c0_8 = arith.constant 0 : index
    %c0_9 = arith.constant 0 : index
    %9 = vector.load %arg5[%c0_8, %c0_9] : memref<1x8xf32, #tpu.memory_space<vmem>>, vector<1x8xf32>
    %10 = vector.broadcast %9 : vector<1x8xf32> to vector<8x8xf32>
    %11 = arith.addf %8, %10 : vector<8x8xf32>
    %c0_10 = arith.constant 0 : index
    %c0_11 = arith.constant 0 : index
    %12 = vector.load %arg6[%c0_10, %c0_11] : memref<8x8xf32, #tpu.memory_space<vmem>>, vector<8x8xf32>
    tpu.vector_store %arg6[%c0_10, %c0_11], %11 {strides = array<i32>} : memref<8x8xf32, #tpu.memory_space<vmem>>, vector<8x8xf32>,
    return
  }
  func.func @transform_0(%arg0: i32) -> (i32, i32) {
    %c0_i32 = arith.constant 0 : i32
    %c0_i32_0 = arith.constant 0 : i32
    return %arg0, %c0_i32 : i32, i32
  }
  func.func @transform_1(%arg0: i32) -> (i32, i32) {
    %c0_i32 = arith.constant 0 : i32
    %c0_i32_0 = arith.constant 0 : i32
    %c0_i32_1 = arith.constant 0 : i32
    return %c0_i32, %c0_i32_0 : i32, i32
  }
  func.func @transform_2(%arg0: i32) -> (i32, i32) {
    %c0_i32 = arith.constant 0 : i32
    %c0_i32_0 = arith.constant 0 : i32
    %c0_i32_1 = arith.constant 0 : i32
    return %c0_i32, %c0_i32_0 : i32, i32
  }
  func.func @transform_3(%arg0: i32) -> (i32, i32) {
    %c0_i32 = arith.constant 0 : i32
    %c0_i32_0 = arith.constant 0 : i32
    %c0_i32_1 = arith.constant 0 : i32
    return %c0_i32, %c0_i32_0 : i32, i32
  }
  func.func @transform_4(%arg0: i32) -> (i32, i32) {
    %c0_i32 = arith.constant 0 : i32
    %c0_i32_0 = arith.constant 0 : i32
    %c0_i32_1 = arith.constant 0 : i32
    return %c0_i32, %c0_i32_0 : i32, i32
  }
  func.func @transform_5(%arg0: i32) -> (i32, i32) {
    %c0_i32 = arith.constant 0 : i32
    %c0_i32_0 = arith.constant 0 : i32
    return %arg0, %c0_i32 : i32, i32
  }
}

</mosaic_0001>

<bundles_post_ra>
// kernel: mlp_forward.1
= control target key start
LH: loop header
LB: loop body
LE: loop exit
PB: predicated region body
PF: predicated region fallthrough
CT: control target
= control target key end

     0   :  { %v301_v0 = vmov 0.0|0.0   ;;  %vm302_vm0 = vmmov 0   ;;  %v303_v3 = vmov 0.0   ;;  %vm30_vm1 = vcmask 130048   ;;  %s400_s1 = inlined_call_operand.vmem [shape: f32[16,128], index: 1, kind: input, shape index: {}]   ;;  %s401_s3 = inlined_call_operand.vmem [shape: f32[128,8], index: 3, kind: input, shape index: {}]   ;;  %s402_s0 = inlined_call_operand.vmem [shape: f32[8,16], index: 0, kind: input, shape index: {}]   ;;  %s403_s2 = inlined_call_operand.vmem [shape: f32[1,128], index: 2, kind: input, shape index: {}]   ;;  %s404_s4 = inlined_call_operand.vmem [shape: f32[1,8], index: 4, kind: input, shape index: {}]   ;;  %s405_s5 = inlined_call_operand.vmem [shape: f32[8,8], index: 5, kind: output, shape index: {}]  }
   0x1   :  { %269 = vmatprep.subr.bf16.mxu0 %v301_v0  ;;  %v21_v1 = vld [vmem:[%s400_s1] sm:$0xff]  ;;  %v22_v2 = vld [vmem:[%s400_s1 + $0x8] sm:$0xff]  ;;  %231 = vmatprep.mubr.msk.f32.mxu0 %vm302_vm0, %v303_v3  ;;  %v107_v7 = vld [vmem:[%s401_s3 + $0x10] sm:$0xff]  ;;  %vm198_vm2 = vcmask 64512  }
   0x2   :  { %v270_v4 = vpack.c.bf16 %v22_v2, %v21_v1  ;;  %272 = vmatprep.subr.bf16.mxu1 %v301_v0  ;;  %v105_v5 = vld [vmem:[%s401_s3] sm:$0xff]  ;;  %v106_v6 = vld [vmem:[%s401_s3 + $0x8] sm:$0xff]  ;;  %266 = vmatprep.mubr.msk.f32.mxu1 %vm302_vm0, %v303_v3  ;;  %v108_v9 = vld [vmem:[%s401_s3 + $0x18] sm:$0xff] }
   0x3   :  { %v273_v8 = vpack.c.bf16 %v106_v6, %v105_v5  ;;  %v20_v10 = vld [vmem:[%s402_s0] sm:$0xff]  ;;  %v276_v11 = vpack.c.bf16 %v108_v9, %v107_v7  ;;  %v110_v13 = vld [vmem:[%s401_s3 + $0x28] sm:$0xff]  ;;  %v111_v15 = vld [vmem:[%s401_s3 + $0x30] sm:$0xff] }
   0x4   :  { %271 = vmatpush3.bf16.msra.mxu0 %v270_v4  ;;  %v109_v12 = vld [vmem:[%s401_s3 + $0x20] sm:$0xff]  ;;  %v112_v16 = vld [vmem:[%s401_s3 + $0x38] sm:$0xff]  ;;  %v114_v19 = vld [vmem:[%s401_s3 + $0x48] sm:$0xff] }
   0x5   :  { %274 = vmatpush3.bf16.msra.mxu1 %v273_v8  ;;  %v279_v14 = vpack.c.bf16 %v110_v13, %v109_v12  ;;  %v282_v17 = vpack.c.bf16 %v112_v16, %v111_v15  ;;  %v113_v18 = vld [vmem:[%s401_s3 + $0x40] sm:$0xff]  ;;  %v115_v21 = vld [vmem:[%s401_s3 + $0x50] sm:$0xff]  ;;  %v116_v22 = vld [vmem:[%s401_s3 + $0x58] sm:$0xff] }
   0x6   :  { %275 = vmatprep.subr.bf16.mxu1 %v301_v0  ;;  %v285_v20 = vpack.c.bf16 %v114_v19, %v113_v18  ;;  %v288_v23 = vpack.c.bf16 %v116_v22, %v115_v21  ;;  %v117_v24 = vld [vmem:[%s401_s3 + $0x60] sm:$0xff]  ;;  %v118_v25 = vld [vmem:[%s401_s3 + $0x68] sm:$0xff]  ;;  %v119_v27 = vld [vmem:[%s401_s3 + $0x70] sm:$0xff] }
   0x7   :  { %232 = vmatmul.mubr.msk.f32.vlgmr.msra.gmra.mrb[0].mxu0 %vm30_vm1, %v20_v10  ;;  %v291_v26 = vpack.c.bf16 %v118_v25, %v117_v24  ;;  %v120_v28 = vld [vmem:[%s401_s3 + $0x78] sm:$0xff]  ;;  %v204_v30 = vld [vmem:[%s403_s2] ss:$0 sm:$0xff] }
   0x8   :  { %v294_v29 = vpack.c.bf16 %v120_v28, %v119_v27  ;;  %v206_v35 = vld [vmem:[%s404_s4] ss:$0 sm:$0xff] }
   0x9   :  { %277 = vmatpush3.bf16.msra.mxu1 %v276_v11 }
   0xa   :  { %278 = vmatprep.subr.bf16.mxu1 %v301_v0 }
   0xd   :  { %280 = vmatpush3.bf16.msra.mxu1 %v279_v14 }
   0xe   :  { %281 = vmatprep.subr.bf16.mxu1 %v301_v0 }
  0x11   :  { %283 = vmatpush3.bf16.msra.mxu1 %v282_v17 }
  0x12   :  { %284 = vmatprep.subr.bf16.mxu1 %v301_v0 }
  0x15   :  { %286 = vmatpush3.bf16.msra.mxu1 %v285_v20 }
  0x16   :  { %287 = vmatprep.subr.bf16.mxu1 %v301_v0 }
  0x19   :  { %289 = vmatpush3.bf16.msra.mxu1 %v288_v23 }
  0x1a   :  { %290 = vmatprep.subr.bf16.mxu1 %v301_v0 }
  0x1d   :  { %292 = vmatpush3.bf16.msra.mxu1 %v291_v26 }
  0x1e   :  { %293 = vmatprep.subr.bf16.mxu1 %v301_v0 }
  0x21   :  { %295 = vmatpush3.bf16.msra.mxu1 %v294_v29 }
  0xda   :  { %v100_v31 = vpop.f32.mrb[0].mxu0 }
  0xdb   :  { %v101_v32 = vadd.f32 %v204_v30, %v100_v31  ;;  %v233_v33 = vpop.f32.mrb[1].mxu0 }
  0xdd   :  { %299 = vtanh.f32 %v101_v32 }
  0xe7   :  { %v300_v34 = vpop.eup %299 }
  0xe8   :  { %267 = vmatmul.mubr.f32.vlgmr.msra.gmra.mrb[0].mxu1 %v300_v34 }
 0x1bb   :  { %v194_v36 = vpop.f32.mrb[0].mxu1 }
 0x1bc   :  { %v195_v37 = vadd.f32 %v206_v35, %v194_v36  ;;  %v268_v38 = vpop.f32.mrb[1].mxu1 }
 0x1be   :  { %199 = vst.msk [vmem:[%s405_s5] sm:$0xff] %vm198_vm2, %v195_v37 }

</bundles_post_ra>
